<compile_context>
chip_gen: v7x
topology: tpu7x:2x2x1
jax: 0.10.0
libtpu: 0.0.40
codegen_flags: <defaults>
</compile_context>

<pallas_src>
import functools

import jax
import jax.numpy as jnp
from jax.experimental import pallas as pl
from jax.experimental.pallas import tpu as pltpu

LANES = 128
MAX_BLOCK_BYTES = 4 * 1024 * 1024   # per-input DMA block target (x2 inputs x2 buffers = 16 MiB)
CHUNK_ELEMS = 128 * 1024            # per compute-chunk elements (~512 KiB f32 intermediates)
LANE_FOLD_CAP = 65536               # cap on the folded lane dim for misaligned numel
NUM_SHARDS = 2                      # megacore sharding hint (v7x); 1 for single-block inputs
# TODO(synk): on v7x verify in xprof that the leading "parallel" axis engages both
# TensorCores; if not, switch it to pltpu.CORE_PARALLEL / an explicit core_map split.


def _cdiv(a, b):
    return -(-a // b)


def _choose_lane_dim(shape, n):
    """Pick a copy-free lane (minor) dim for the 2-D view of a contiguous array."""
    if n % LANES == 0:
        return LANES                       # perfect lane-dense view, zero copies
    # numel not lane aligned: fold trailing dims (still a free bitcast reshape)
    # until the lane dim is >= 1024, so relative lane-padding waste is small.
    best = None
    l = 1
    for d in reversed(shape):
        l *= d
        if l > LANE_FOLD_CAP:
            break
        best = l
        if l >= 1024:
            break
    if best is None:                       # absurdly large trailing dim: stay correct
        best = shape[-1]
    return best


def _focal_sums_kernel(pred_ref, gt_ref, loss_ref, npos_ref, *,
                       tile_rows, chunk_rows, sub, lane_dim,
                       tiles_per_shard, n_blocks, valid_rows, exact):
    shard = pl.program_id(0)
    step = pl.program_id(1)
    blk = shard * tiles_per_shard + step    # NOTE: must mirror the index_map (unclamped)
    num_chunks = tile_rows // chunk_rows

    @pl.when(step == 0)
    def _():
        loss_ref[...] = jnp.zeros_like(loss_ref)
        npos_ref[...] = jnp.zeros_like(npos_ref)

    def load_chunk(c):
        r0 = c * chunk_rows
        if not isinstance(r0, int) and chunk_rows % 8 == 0:
            r0 = pl.multiple_of(r0, 8)
        p = pred_ref[pl.ds(r0, chunk_rows), :].astype(jnp.float32)
        g = gt_ref[pl.ds(r0, chunk_rows), :].astype(jnp.float32)
        return r0, p, g

    def accumulate(p, g):
        # clamp_max(0.999).clamp_min(0.0001)
        p = jnp.maximum(jnp.minimum(p, 0.999), 0.0001)
        pos = g == 1.0          # exact compare, same as torch gt.eq(1)
        neg = g < 1.0
        omp = 1.0 - p
        omg = 1.0 - g
        omg2 = omg * omg
        neg_w = omg2 * omg2                         # (1 - gt)^4
        # single transcendental per element: log(pred) for pos, log(1-pred) else
        log_v = jnp.log(jnp.where(pos, p, omp))
        w_pos = omp * omp                           # (1 - pred)^2
        w_neg = p * p * neg_w                       # pred^2 * (1 - gt)^4
        # keep the explicit `neg` select so gt > 1 (incl. the masked-row sentinel
        # 2.0) contributes exactly 0 -- matches the PyTorch module bit-for-bit.
        weight = jnp.where(pos, w_pos, jnp.where(neg, w_neg, 0.0))
        elem = log_v * weight                       # pos_loss + neg_loss, per element
        pos_f = pos.astype(jnp.float32)
        if sub == 1:
            dl = jnp.sum(elem, axis=0, keepdims=True).reshape(1, 1, lane_dim)
            dn = jnp.sum(pos_f, axis=0, keepdims=True).reshape(1, 1, lane_dim)
        else:
            dl = jnp.sum(elem.reshape(chunk_rows // sub, sub, lane_dim),
                         axis=0).reshape(1, sub, lane_dim)
            dn = jnp.sum(pos_f.reshape(chunk_rows // sub, sub, lane_dim),
                         axis=0).reshape(1, sub, lane_dim)
        loss_ref[...] += dl
        npos_ref[...] += dn

    def fast_chunk(c):
        _, p, g = load_chunk(c)
        accumulate(p, g)

    def masked_chunk(c, block_row0):
        r0, p, g = load_chunk(c)
        # Overhang rows of the partial trailing block hold stale VMEM (possibly
        # NaN/Inf).  Sanitize BEFORE clamp/log so nothing can poison the sums:
        # pred=0.5 keeps the log finite, gt=2.0 makes the element neither pos
        # nor neg (weight == 0, npos contribution == 0).
        row = block_row0 + r0 + jax.lax.broadcasted_iota(jnp.int32, p.shape, 0)
        valid = row < valid_rows
        accumulate(jnp.where(valid, p, 0.5), jnp.where(valid, g, 2.0))

    def run(chunk_fn):
        if num_chunks == 1:
            chunk_fn(0)
        else:
            @pl.loop(0, num_chunks)
            def _(c):
                chunk_fn(c)

    if exact:
        # Every grid step maps to a distinct, fully-populated block: no masking.
        run(fast_chunk)
    else:
        is_real = blk < n_blocks                        # cdiv-sharding duplicate steps
        is_full = (blk + 1) * tile_rows <= valid_rows   # partial trailing block?

        @pl.when(jnp.logical_and(is_real, is_full))
        def _():                                        # hot path: zero masking ops
            run(fast_chunk)

        @pl.when(jnp.logical_and(is_real, jnp.logical_not(is_full)))
        def _():                                        # only the one partial block
            block_row0 = blk * tile_rows
            run(lambda c: masked_chunk(c, block_row0))


@jax.jit
def keypoint_focal_loss(out, target):
    """out, target: same-shape arrays (f32 or bf16). Returns scalar f32 loss."""
    assert out.shape == target.shape
    n = out.size

    # ---- copy-free lane-dense 2-D view (R, L), R * L == n -------------------
    lane_dim = _choose_lane_dim(out.shape, n)
    rows = n // lane_dim
    pred2d = out.reshape(rows, lane_dim)       # bitcast reshape, no HBM traffic
    gt2d = target.reshape(rows, lane_dim)

    # ---- tile sizing ---------------------------------------------------------
    itemsize = max(int(jnp.dtype(out.dtype).itemsize),
                   int(jnp.dtype(target.dtype).itemsize), 2)
    lanes_padded = _cdiv(lane_dim, LANES) * LANES
    rows_budget = max(MAX_BLOCK_BYTES // (lanes_padded * itemsize), 8)
    if rows <= rows_budget:
        tile_rows = rows                        # block dim == full dim -> always legal
    else:
        tile_rows = max((rows_budget // 8) * 8, 8)

    # compute-chunk rows (divisor of tile_rows, multiple of 8 so dynamic slices
    # stay sublane-aligned); bounds live f32 intermediates independent of the
    # DMA block size.
    if tile_rows * lanes_padded <= 2 * CHUNK_ELEMS or tile_rows % 8 != 0:
        chunk_rows = tile_rows
    else:
        chunk_rows = tile_rows
        target_rows = max(CHUNK_ELEMS // lanes_padded, 8)
        for c in range(min(target_rows, tile_rows), 7, -1):
            if c % 8 == 0 and tile_rows % c == 0:
                chunk_rows = c
                break
    sub = 8 if chunk_rows % 8 == 0 else 1       # sublanes kept in the partial sums

    n_blocks = _cdiv(rows, tile_rows)
    num_shards = NUM_SHARDS if n_blocks >= NUM_SHARDS else 1
    tiles_per_shard = _cdiv(n_blocks, num_shards)
    # Are all grid steps distinct, fully-populated blocks?  If so the kernel
    # emits no masking / skipping code at all.
    exact = (num_shards * tiles_per_shard == n_blocks) and (n_blocks * tile_rows == rows)

    kernel = functools.partial(
        _focal_sums_kernel,
        tile_rows=tile_rows, chunk_rows=chunk_rows, sub=sub, lane_dim=lane_dim,
        tiles_per_shard=tiles_per_shard, n_blocks=n_blocks, valid_rows=rows,
        exact=exact,
    )

    def in_map(s, i):
        blk = s * tiles_per_shard + i
        # Clamp so cdiv over-coverage steps stay in bounds; the kernel skips
        # their accumulation entirely (blk >= n_blocks) -- keep this clamp and
        # the in-kernel `blk` formula in sync.
        return (jnp.minimum(blk, n_blocks - 1), 0)

    cost = pl.CostEstimate(
        flops=17 * n,
        transcendentals=n,
        bytes_accessed=n * (int(jnp.dtype(out.dtype).itemsize)
                            + int(jnp.dtype(target.dtype).itemsize))
                       + 2 * num_shards * sub * lane_dim * 4,
    )

    loss_parts, npos_parts = pl.pallas_call(
        kernel,
        out_shape=(
            jax.ShapeDtypeStruct((num_shards, sub, lane_dim), jnp.float32),
            jax.ShapeDtypeStruct((num_shards, sub, lane_dim), jnp.float32),
        ),
        grid=(num_shards, tiles_per_shard),
        in_specs=[
            pl.BlockSpec((tile_rows, lane_dim), in_map),
            pl.BlockSpec((tile_rows, lane_dim), in_map),
        ],
        out_specs=(
            pl.BlockSpec((1, sub, lane_dim), lambda s, i: (s, 0, 0)),
            pl.BlockSpec((1, sub, lane_dim), lambda s, i: (s, 0, 0)),
        ),
        compiler_params=pltpu.CompilerParams(
            dimension_semantics=("parallel", "arbitrary"),
            vmem_limit_bytes=32 * 1024 * 1024),
        cost_estimate=cost,
    )(pred2d, gt2d)

    total_loss = jnp.sum(loss_parts)            # pos_loss + neg_loss
    num_pos = jnp.sum(npos_parts)
    # num_pos == 0 => pos_loss == 0 exactly, so -total_loss == -neg_loss.
    denom = jnp.where(num_pos > 0.0, num_pos, 1.0)
    return -total_loss / denom


def _reference_loss(out, target):
    # Pure-JAX reference of the PyTorch module (for sanity check).
    p = jnp.clip(out.astype(jnp.float32), 0.0001, 0.999)
    g = target.astype(jnp.float32)
    pos = (g == 1.0).astype(jnp.float32)
    neg = (g < 1.0).astype(jnp.float32)
    nw = (1.0 - g) ** 4
    pos_l = jnp.sum(jnp.log(p) * (1.0 - p) ** 2 * pos)
    neg_l = jnp.sum(jnp.log(1.0 - p) * p ** 2 * nw * neg)
    n_pos = jnp.sum(pos)
    return jnp.where(n_pos == 0.0, -neg_l, -(pos_l + neg_l) / n_pos)


if __name__ == "__main__":
    key = jax.random.PRNGKey(0)

    # Case 1: small NCHW, lane-aligned numel (2*4*16*16 = 2048), single block.
    k1, k2, k3 = jax.random.split(key, 3)
    B, C, H, W = 2, 4, 16, 16
    pred = jax.random.uniform(k1, (B, C, H, W), jnp.float32, 0.01, 0.99)
    gt = jax.random.uniform(k2, (B, C, H, W), jnp.float32, 0.0, 0.95)
    gt = jnp.where(jax.random.uniform(k3, (B, C, H, W)) > 0.98, 1.0, gt)
    loss = keypoint_focal_loss(pred, gt)
    jax.block_until_ready(loss)
    ref = _reference_loss(pred, gt)
    assert jnp.allclose(loss, ref, rtol=1e-4, atol=1e-4), (loss, ref)

    # Case 2: numel % 128 != 0 -> copy-free folded lane view (L = 130*130).
    k4, k5, k6 = jax.random.split(jax.random.PRNGKey(1), 3)
    B2, C2, H2, W2 = 2, 8, 130, 130
    pred2 = jax.random.uniform(k4, (B2, C2, H2, W2), jnp.float32, 0.01, 0.99)
    gt2 = jax.random.uniform(k5, (B2, C2, H2, W2), jnp.float32, 0.0, 0.95)
    gt2 = jnp.where(jax.random.uniform(k6, (B2, C2, H2, W2)) > 0.995, 1.0, gt2)
    loss2 = keypoint_focal_loss(pred2, gt2)
    jax.block_until_ready(loss2)
    ref2 = _reference_loss(pred2, gt2)
    assert jnp.allclose(loss2, ref2, rtol=5e-4, atol=1e-3), (loss2, ref2)

    # Case 3: bf16 inputs, multiple blocks, 2-shard grid, one skipped duplicate
    # step and a partial trailing block (exercises both pl.when paths).
    k7, k8, k9 = jax.random.split(jax.random.PRNGKey(2), 3)
    B3, C3, H3, W3 = 4, 5, 360, 360
    pred3 = jax.random.uniform(k7, (B3, C3, H3, W3), jnp.float32, 0.01, 0.99)
    gt3 = jax.random.uniform(k8, (B3, C3, H3, W3), jnp.float32, 0.0, 0.95)
    gt3 = jnp.where(jax.random.uniform(k9, (B3, C3, H3, W3)) > 0.998, 1.0, gt3)
    pred3 = pred3.astype(jnp.bfloat16)
    gt3 = gt3.astype(jnp.bfloat16)     # heatmap peaks stay exactly 1.0 in bf16
    loss3 = keypoint_focal_loss(pred3, gt3)
    jax.block_until_ready(loss3)
    ref3 = _reference_loss(pred3, gt3)
    assert jnp.allclose(loss3, ref3, rtol=1e-3, atol=1e-3), (loss3, ref3)

    print("KERNEL_OK")
</pallas_src>

<mosaic_0001>
module attributes {stable_mosaic.version = 11 : i64} {
  func.func @_focal_sums_kernel(%arg0: i32, %arg1: i32, %arg2: memref<16x128xf32, #tpu.memory_space<vmem>>, %arg3: memref<16x128xf32, #tpu.memory_space<vmem>>, %arg4: memref<1x8x128xf32, #tpu.memory_space<vmem>>, %arg5: memref<1x8x128xf32, #tpu.memory_space<vmem>>) attributes {dimension_semantics = [#tpu.dimension_semantics<parallel>, #tpu.dimension_semantics<arbitrary>], iteration_bounds = array<i64: 1, 1>, scalar_prefetch = 0 : i64, scratch_operands = 0 : i64, tpu.core_type = #tpu.core_type<tc>, window_params = [{transform_indices = @transform_0, window_bounds = array<i64: 16, 128>}, {transform_indices = @transform_1, window_bounds = array<i64: 16, 128>}, {transform_indices = @transform_2, window_bounds = array<i64: 1, 8, 128>}, {transform_indices = @transform_3, window_bounds = array<i64: 1, 8, 128>}]} {
    %c0_i32 = arith.constant 0 : i32
    %0 = arith.cmpi eq, %arg1, %c0_i32 : i32
    %1 = arith.extui %0 : i1 to i32
    %c0_i32_0 = arith.constant 0 : i32
    %2 = arith.cmpi ne, %1, %c0_i32_0 : i32
    scf.if %2 {
      %cst_24 = arith.constant 0.000000e+00 : f32
      %42 = vector.broadcast %cst_24 : f32 to vector<1x8x128xf32>
      %c0_25 = arith.constant 0 : index
      %c0_26 = arith.constant 0 : index
      %c0_27 = arith.constant 0 : index
      %43 = vector.load %arg4[%c0_25, %c0_26, %c0_27] : memref<1x8x128xf32, #tpu.memory_space<vmem>>, vector<1x8x128xf32>
      tpu.vector_store %arg4[%c0_25, %c0_26, %c0_27], %42 {strides = array<i32>} : memref<1x8x128xf32, #tpu.memory_space<vmem>>, vector<1x8x128xf32>,
      %cst_28 = arith.constant 0.000000e+00 : f32
      %44 = vector.broadcast %cst_28 : f32 to vector<1x8x128xf32>
      %c0_29 = arith.constant 0 : index
      %c0_30 = arith.constant 0 : index
      %c0_31 = arith.constant 0 : index
      %45 = vector.load %arg5[%c0_29, %c0_30, %c0_31] : memref<1x8x128xf32, #tpu.memory_space<vmem>>, vector<1x8x128xf32>
      tpu.vector_store %arg5[%c0_29, %c0_30, %c0_31], %44 {strides = array<i32>} : memref<1x8x128xf32, #tpu.memory_space<vmem>>, vector<1x8x128xf32>,
    } else {
    }
    %c0 = arith.constant 0 : index
    %c0_1 = arith.constant 0 : index
    %3 = vector.load %arg2[%c0, %c0_1] : memref<16x128xf32, #tpu.memory_space<vmem>>, vector<16x128xf32>
    %c0_2 = arith.constant 0 : index
    %c0_3 = arith.constant 0 : index
    %4 = vector.load %arg3[%c0_2, %c0_3] : memref<16x128xf32, #tpu.memory_space<vmem>>, vector<16x128xf32>
    %cst = arith.constant 9.990000e-01 : f32
    %5 = vector.broadcast %cst : f32 to vector<16x128xf32>
    %6 = arith.minimumf %3, %5 : vector<16x128xf32>
    %cst_4 = arith.constant 9.99999974E-5 : f32
    %7 = vector.broadcast %cst_4 : f32 to vector<16x128xf32>
    %8 = arith.maximumf %6, %7 : vector<16x128xf32>
    %cst_5 = arith.constant 1.000000e+00 : f32
    %9 = vector.broadcast %cst_5 : f32 to vector<16x128xf32>
    %10 = arith.cmpf oeq, %4, %9 : vector<16x128xf32>
    %cst_6 = arith.constant 1.000000e+00 : f32
    %11 = vector.broadcast %cst_6 : f32 to vector<16x128xf32>
    %12 = arith.cmpf olt, %4, %11 : vector<16x128xf32>
    %cst_7 = arith.constant 1.000000e+00 : f32
    %13 = vector.broadcast %cst_7 : f32 to vector<16x128xf32>
    %14 = arith.subf %13, %8 : vector<16x128xf32>
    %cst_8 = arith.constant 1.000000e+00 : f32
    %15 = vector.broadcast %cst_8 : f32 to vector<16x128xf32>
    %16 = arith.subf %15, %4 : vector<16x128xf32>
    %17 = arith.mulf %16, %16 : vector<16x128xf32>
    %18 = arith.mulf %17, %17 : vector<16x128xf32>
    %19 = arith.select %10, %8, %14 : vector<16x128xi1>, vector<16x128xf32>
    %20 = math.log %19 : vector<16x128xf32>
    %21 = arith.mulf %14, %14 : vector<16x128xf32>
    %22 = arith.mulf %8, %8 : vector<16x128xf32>
    %23 = arith.mulf %22, %18 : vector<16x128xf32>
    %cst_9 = arith.constant 0.000000e+00 : f32
    %24 = vector.broadcast %cst_9 : f32 to vector<16x128xf32>
    %25 = arith.select %12, %23, %24 : vector<16x128xi1>, vector<16x128xf32>
    %26 = arith.select %10, %21, %25 : vector<16x128xi1>, vector<16x128xf32>
    %27 = arith.mulf %20, %26 : vector<16x128xf32>
    %28 = arith.extui %10 : vector<16x128xi1> to vector<16x128xi32>
    %29 = arith.sitofp %28 : vector<16x128xi32> to vector<16x128xf32>
    %30 = vector.shape_cast %27 : vector<16x128xf32> to vector<2x8x128xf32>
    %cst_10 = arith.constant dense<0.000000e+00> : vector<8x128xf32>
    %31 = vector.multi_reduction <add>, %30, %cst_10 [0] : vector<2x8x128xf32> to vector<8x128xf32>
    %32 = vector.shape_cast %31 : vector<8x128xf32> to vector<1x8x128xf32>
    %33 = vector.shape_cast %29 : vector<16x128xf32> to vector<2x8x128xf32>
    %cst_11 = arith.constant dense<0.000000e+00> : vector<8x128xf32>
    %34 = vector.multi_reduction <add>, %33, %cst_11 [0] : vector<2x8x128xf32> to vector<8x128xf32>
    %35 = vector.shape_cast %34 : vector<8x128xf32> to vector<1x8x128xf32>
    %c0_12 = arith.constant 0 : index
    %c0_13 = arith.constant 0 : index
    %c0_14 = arith.constant 0 : index
    %36 = vector.load %arg4[%c0_12, %c0_13, %c0_14] : memref<1x8x128xf32, #tpu.memory_space<vmem>>, vector<1x8x128xf32>
    %37 = arith.addf %36, %32 : vector<1x8x128xf32>
    %c0_15 = arith.constant 0 : index
    %c0_16 = arith.constant 0 : index
    %c0_17 = arith.constant 0 : index
    %38 = vector.load %arg4[%c0_15, %c0_16, %c0_17] : memref<1x8x128xf32, #tpu.memory_space<vmem>>, vector<1x8x128xf32>
    tpu.vector_store %arg4[%c0_15, %c0_16, %c0_17], %37 {strides = array<i32>} : memref<1x8x128xf32, #tpu.memory_space<vmem>>, vector<1x8x128xf32>,
    %c0_18 = arith.constant 0 : index
    %c0_19 = arith.constant 0 : index
    %c0_20 = arith.constant 0 : index
    %39 = vector.load %arg5[%c0_18, %c0_19, %c0_20] : memref<1x8x128xf32, #tpu.memory_space<vmem>>, vector<1x8x128xf32>
    %40 = arith.addf %39, %35 : vector<1x8x128xf32>
    %c0_21 = arith.constant 0 : index
    %c0_22 = arith.constant 0 : index
    %c0_23 = arith.constant 0 : index
    %41 = vector.load %arg5[%c0_21, %c0_22, %c0_23] : memref<1x8x128xf32, #tpu.memory_space<vmem>>, vector<1x8x128xf32>
    tpu.vector_store %arg5[%c0_21, %c0_22, %c0_23], %40 {strides = array<i32>} : memref<1x8x128xf32, #tpu.memory_space<vmem>>, vector<1x8x128xf32>,
    return
  }
  func.func @transform_0(%arg0: i32, %arg1: i32) -> (i32, i32) {
    %c1_i32 = arith.constant 1 : i32
    %0 = arith.muli %arg0, %c1_i32 : i32
    %1 = arith.addi %0, %arg1 : i32
    %c0_i32 = arith.constant 0 : i32
    %2 = arith.minsi %1, %c0_i32 : i32
    %c0_i32_0 = arith.constant 0 : i32
    %c0_i32_1 = arith.constant 0 : i32
    return %2, %c0_i32_0 : i32, i32
  }
  func.func @transform_1(%arg0: i32, %arg1: i32) -> (i32, i32) {
    %c1_i32 = arith.constant 1 : i32
    %0 = arith.muli %arg0, %c1_i32 : i32
    %1 = arith.addi %0, %arg1 : i32
    %c0_i32 = arith.constant 0 : i32
    %2 = arith.minsi %1, %c0_i32 : i32
    %c0_i32_0 = arith.constant 0 : i32
    %c0_i32_1 = arith.constant 0 : i32
    return %2, %c0_i32_0 : i32, i32
  }
  func.func @transform_2(%arg0: i32, %arg1: i32) -> (i32, i32, i32) {
    %c0_i32 = arith.constant 0 : i32
    %c0_i32_0 = arith.constant 0 : i32
    %c0_i32_1 = arith.constant 0 : i32
    return %arg0, %c0_i32, %c0_i32_0 : i32, i32, i32
  }
  func.func @transform_3(%arg0: i32, %arg1: i32) -> (i32, i32, i32) {
    %c0_i32 = arith.constant 0 : i32
    %c0_i32_0 = arith.constant 0 : i32
    %c0_i32_1 = arith.constant 0 : i32
    return %arg0, %c0_i32, %c0_i32_0 : i32, i32, i32
  }
}

</mosaic_0001>

<bundles_post_ra>
// kernel: keypoint_focal_loss.1
= control target key start
LH: loop header
LB: loop body
LE: loop exit
PB: predicated region body
PF: predicated region fallthrough
CT: control target
= control target key end

     0   :  { %v160_v10 = vmov 0.0   ;;  %s205_s0 = inlined_call_operand.vmem [shape: f32[16,128], index: 0, kind: input, shape index: {}]   ;;  %s206_s1 = inlined_call_operand.vmem [shape: f32[16,128], index: 1, kind: input, shape index: {}]   ;;  %s207_s3 = inlined_call_operand.vmem [shape: f32[1,8,128], index: 3, kind: output, shape index: {1}]   ;;  %s208_s2 = inlined_call_operand.vmem [shape: f32[1,8,128], index: 2, kind: output, shape index: {0}]  }
   0x1   :  { %v83_v0 = vld [vmem:[%s205_s0] sm:$0xff]  ;;  %v84_v1 = vld [vmem:[%s205_s0 + $0x8] sm:$0xff] }
   0x2   :  { %v85_v2 = vld [vmem:[%s206_s1] sm:$0xff]  ;;  %v86_v3 = vld [vmem:[%s206_s1 + $0x8] sm:$0xff]  ;;  %v87_v4 = vmin.f32 %v83_v0, 0.999  ;;  %v88_v5 = vmin.f32 %v84_v1, 0.999 }
   0x3   :  { %vm91_vm0 = vcmp.eq.f32.partialorder %v85_v2, 1.0  ;;  %vm92_vm1 = vcmp.eq.f32.partialorder %v86_v3, 1.0  ;;  %v97_v6 = vsub.f32 1.0, %v85_v2  ;;  %v98_v9 = vsub.f32 1.0, %v86_v3 }
   0x4   :  { %v89_v7 = vmax.f32 %v87_v4, 0.0001  ;;  %v90_v8 = vmax.f32 %v88_v5, 0.0001  ;;  %v153_v11 = vsel %vm91_vm0, 1.0, %v160_v10  ;;  %v154_v13 = vsel %vm92_vm1, 1.0, %v160_v10 }
   0x5   :  { %v99_v12 = vmul.f32 %v97_v6, %v97_v6  ;;  %v100_v16 = vmul.f32 %v98_v9, %v98_v9  ;;  %v126_v17 = vadd.f32 %v154_v13, %v153_v11  ;;  %vm93_vm2 = vcmp.lt.f32.partialorder %v85_v2, 1.0 }
   0x6   :  { %v95_v14 = vsub.f32 1.0, %v89_v7  ;;  %v96_v15 = vsub.f32 1.0, %v90_v8  ;;  %v111_v21 = vmul.f32 %v89_v7, %v89_v7  ;;  %v112_v23 = vmul.f32 %v90_v8, %v90_v8 }
   0x7   :  { %v101_v18 = vmul.f32 %v99_v12, %v99_v12  ;;  %v102_v22 = vmul.f32 %v100_v16, %v100_v16  ;;  %132 = vst [vmem:[%s207_s3] sm:$0xff] %v126_v17  ;;  %vm94_vm3 = vcmp.lt.f32.partialorder %v86_v3, 1.0 }
   0x8   :  { %v103_v19 = vsel %vm91_vm0, %v89_v7, %v95_v14  ;;  %v104_v20 = vsel %vm92_vm1, %v90_v8, %v96_v15  ;;  %v109_v26 = vmul.f32 %v95_v14, %v95_v14  ;;  %v110_v27 = vmul.f32 %v96_v15, %v96_v15 }
   0x9   :  { %156 = vlog2.f32 %v103_v19  ;;  %v113_v24 = vmul.f32 %v111_v21, %v101_v18  ;;  %v114_v25 = vmul.f32 %v112_v23, %v102_v22 }
   0xa   :  { %158 = vlog2.f32 %v104_v20 }
   0xb   :  { %v115_v28 = vsel %vm93_vm2, %v113_v24, 0.0  ;;  %v116_v29 = vsel %vm94_vm3, %v114_v25, 0.0 }
   0xc   :  { %v117_v31 = vsel %vm91_vm0, %v109_v26, %v115_v28  ;;  %v118_v34 = vsel %vm92_vm1, %v110_v27, %v116_v29 }
  0x13   :  { %v157_v30 = vpop.eup %156 }
  0x14   :  { %v159_v32 = vpop.eup %158  ;;  %v106_v33 = vmul.f32 0.6931472, %v157_v30 }
  0x15   :  { %v108_v35 = vmul.f32 0.6931472, %v159_v32 }
  0x16   :  { %v119_v36 = vmul.f32 %v117_v31, %v106_v33 }
  0x17   :  { %v120_v37 = vmul.f32 %v118_v34, %v108_v35 }
  0x19   :  { %v125_v38 = vadd.f32 %v120_v37, %v119_v36 }
  0x1b   :  { %129 = vst [vmem:[%s208_s2] sm:$0xff] %v125_v38 }

</bundles_post_ra>
